<compile_context>
chip_gen: v7x
topology: tpu7x:2x2x1
jax: 0.10.0
libtpu: 0.0.40
codegen_flags: <defaults>
</compile_context>

<pallas_src>
import functools

import jax
import jax.numpy as jnp
from jax.experimental import pallas as pl
from jax.experimental.pallas import tpu as pltpu


def _self_attention_kernel(x_ref, wqkv_ref, bu_ref, o_ref, *,
                           heads, k, t, bb, lane_dense):
    hk = heads * k
    m = bb * t
    g = bb * heads

    # (bb, t, k) -> (m, k): merge leading dims; keep the compute dtype.
    x = x_ref[...].reshape(m, k)

    # One fused MXU matmul for [Q*k^-1/2 | K | V'] where V'_h = X @ (Wv_h Wu_h)
    # (unify weight folded wrapper-side).  f32 result per review.
    qkv = jnp.dot(x, wqkv_ref[...],
                  preferred_element_type=jnp.float32)            # (m, 3*hk) f32

    # Lane-aligned splits (hk is a multiple of 128 here).
    q = qkv[:, 0 * hk:1 * hk]
    kk = qkv[:, 1 * hk:2 * hk]
    vu = qkv[:, 2 * hk:3 * hk]

    def split_heads(z):  # (m, hk) -> (g, t, k); the one remaining relayout/tensor
        return z.reshape(bb, t, heads, k).transpose(0, 2, 1, 3).reshape(g, t, k)

    qh = split_heads(q)
    kh = split_heads(kk)
    vh = split_heads(vu)

    # Scores for all (batch, head) pairs; contraction over the feature dim
    # (no materialized K transpose).  All attention math stays in f32.
    s = jnp.einsum('gtd,gsd->gts', qh, kh,
                   preferred_element_type=jnp.float32)           # (g, t, t) f32
    s = s - jnp.max(s, axis=-1, keepdims=True)
    p = jnp.exp(s)
    # EUP approx reciprocal (separate issue slot, ~1e-3 rel error).
    p = p * pl.reciprocal(jnp.sum(p, axis=-1, keepdims=True), approx=True)

    # P @ V' batched over (batch, head); f32 result.
    o = jnp.einsum('gts,gsd->gtd', p, vh,
                   preferred_element_type=jnp.float32)           # (g, t, k) f32

    # Heads already carry the unify projection, so merging heads is just a sum
    # over the head axis -- no transpose / lane refold on the output side.
    out = o.reshape(bb, heads, t, k).sum(axis=1)                 # (bb, t, k) f32
    out = out + bu_ref[...].astype(jnp.float32)                  # bias (1, k)

    if lane_dense:
        # Lane-dense store: (bb, t, k) -> (bb, 1, t*k) slab (t*k % 128 == 0).
        o_ref[...] = out.reshape(bb, 1, t * k).astype(o_ref.dtype)
    else:
        o_ref[...] = out.astype(o_ref.dtype)


def _device_tuning():
    """Per-generation knobs: (target rows per grid step, VMEM limit cap)."""
    kind = ""
    try:
        kind = jax.devices()[0].device_kind.lower()
    except Exception:
        pass
    if "v5 lite" in kind or "v5e" in kind:
        return 128, 100 << 20     # 128x128 MXU passes; 128 MiB physical VMEM
    if "v6" in kind:
        return 512, 100 << 20     # 256-wide MXU; 128 MiB physical VMEM
    return 256, 56 << 20          # v7x / unknown: 2 TCs, 64 MiB physical VMEM


def _choose_batch_block(b, t, target_rows=256):
    """Batch elements per grid step.

    Preference order (per review):
      1. largest divisor bb of b with bb*t <= ~target_rows rows, an even grid
         length (b // bb) % 2 == 0 (keeps both v7x TensorCores fed), and
         bb*t >= 128 rows (full MXU tiles);
      2. otherwise the largest such bb with an even grid length;
      3. otherwise any bb giving >= 2 steps whenever b > 1;
      4. otherwise bb = b (single step; only when b == 1 effectively).
    """
    divisors = [d for d in range(1, b + 1) if b % d == 0]
    row_cap = max(target_rows, t)
    capped = [d for d in divisors if d * t <= row_cap] or [1]
    even = [d for d in capped if (b // d) % 2 == 0]
    full = [d for d in even if d * t >= 128]
    if full:
        return max(full)
    if even:
        return max(even)
    multi = [d for d in capped if b // d >= 2]
    if multi:
        return max(multi)
    return max(capped)


def _vmem_limit_bytes(bb, t, k, heads, cdtype, cap):
    """Explicit scoped-VMEM budget from the actual block/intermediate sizes."""
    cd = jnp.dtype(cdtype).itemsize
    f32 = 4
    hk = heads * k
    m, g = bb * t, bb * heads
    io = (2 * bb * t * k * cd          # x block (double-buffered)
          + 2 * bb * t * k * cd        # output slab (double-buffered)
          + 2 * k * 3 * hk * cd        # fused wqkv (constant index map)
          + 2 * k * f32)               # bias
    interm = (m * 3 * hk * f32         # fused projection result
              + 3 * g * t * k * f32    # head-split q / k / v'
              + 2 * g * t * t * f32    # scores + probs
              + g * t * k * f32        # attention output
              + bb * t * k * f32)      # head-summed output
    est = io + 2 * interm + (4 << 20)  # 2x headroom + slack
    return int(min(max(est, 32 << 20), cap))


def prepare_self_attention_params(wq, wk, wv, wu, bu, *, heads,
                                  compute_dtype=jnp.bfloat16):
    """One-time weight prep, hoisted off the forward path.

    wq/wk/wv: (k, heads*k); wu: (heads*k, k); bu: (k,) -- the (in, out)
    transpose of the PyTorch nn.Linear .weight tensors.

    Builds, in f32 then cast once to compute_dtype:
      wqkv = [Wq / sqrt(k) | Wk | Wvu]   with  Wvu_h = Wv_h @ Wu_h per head,
    so the kernel needs a single fused projection and no separate unify matmul
    (P_h @ (X Wv_h Wu_h) == (P_h @ V_h) @ Wu_h, summed over heads).
    """
    k_in, hk = wq.shape
    assert hk % heads == 0
    k = hk // heads
    scale = 1.0 / (k ** 0.5)  # == k**-0.25 applied to both q and k
    wq32 = wq.astype(jnp.float32) * scale
    wk32 = wk.astype(jnp.float32)
    wv32 = wv.astype(jnp.float32).reshape(k_in, heads, k)
    wu32 = wu.astype(jnp.float32).reshape(heads, k, k)
    wvu = jnp.einsum('ihd,hde->ihe', wv32, wu32).reshape(k_in, hk)
    wqkv = jnp.concatenate([wq32, wk32, wvu], axis=1).astype(compute_dtype)
    return dict(heads=heads,
                wqkv=wqkv,                                  # (k, 3*hk)
                bu=bu.reshape(1, k).astype(jnp.float32))    # (1, k) f32


def self_attention_pallas(x, params):
    """x: (b, t, k); params from prepare_self_attention_params()."""
    b, t, k = x.shape
    heads = params["heads"]
    hk = heads * k
    wqkv = params["wqkv"]
    bu2 = params["bu"]
    assert wqkv.shape == (k, 3 * hk)

    cdtype = wqkv.dtype
    x = x.astype(cdtype)

    target_rows, vmem_cap = _device_tuning()
    bb = _choose_batch_block(b, t, target_rows=target_rows)
    grid = (b // bb,)

    lane_dense = (t * k) % 128 == 0
    if lane_dense:
        out_shape = jax.ShapeDtypeStruct((b, 1, t * k), cdtype)
        out_spec = pl.BlockSpec((bb, 1, t * k), lambda i: (i, 0, 0))
    else:
        out_shape = jax.ShapeDtypeStruct((b, t, k), cdtype)
        out_spec = pl.BlockSpec((bb, t, k), lambda i: (i, 0, 0))

    kernel = functools.partial(_self_attention_kernel, heads=heads, k=k, t=t,
                               bb=bb, lane_dense=lane_dense)

    out = pl.pallas_call(
        kernel,
        out_shape=out_shape,
        grid_spec=pltpu.PrefetchScalarGridSpec(
            num_scalar_prefetch=0,
            grid=grid,
            in_specs=[
                pl.BlockSpec((bb, t, k), lambda i: (i, 0, 0)),   # x block
                pl.BlockSpec((k, 3 * hk), lambda i: (0, 0)),     # fused weights
                pl.BlockSpec((1, k), lambda i: (0, 0)),          # bias
            ],
            out_specs=out_spec,
        ),
        compiler_params=pltpu.CompilerParams(
            dimension_semantics=("parallel",),
            vmem_limit_bytes=_vmem_limit_bytes(bb, t, k, heads, cdtype,
                                               cap=vmem_cap)),
    )(x, wqkv, bu2)

    return out.reshape(b, t, k)


def self_attention_ref(x, wq, wk, wv, wu, bu, *, heads):
    """Pure-JAX reference mirroring the PyTorch forward exactly (f32)."""
    b, t, k = x.shape
    h = heads
    q = (x @ wq).reshape(b, t, h, k)
    kk = (x @ wk).reshape(b, t, h, k)
    v = (x @ wv).reshape(b, t, h, k)
    q = jnp.transpose(q, (0, 2, 1, 3)).reshape(b * h, t, k) / k ** 0.25
    kk = jnp.transpose(kk, (0, 2, 1, 3)).reshape(b * h, t, k) / k ** 0.25
    v = jnp.transpose(v, (0, 2, 1, 3)).reshape(b * h, t, k)
    dot = jnp.einsum('btk,bsk->bts', q, kk)
    dot = jax.nn.softmax(dot, axis=2)
    out = jnp.einsum('bts,bsk->btk', dot, v).reshape(b, h, t, k)
    out = jnp.transpose(out, (0, 2, 1, 3)).reshape(b, t, h * k)
    return out @ wu + bu


if __name__ == "__main__":
    # Small shapes consistent with the module: b=2, t=8, k(embed)=32, heads=8.
    b, t, k, heads = 2, 8, 32, 8
    key = jax.random.PRNGKey(0)
    kx, kq, kk_, kv, ku, kb = jax.random.split(key, 6)

    x = jax.random.normal(kx, (b, t, k), dtype=jnp.float32)
    # nn.Linear weight is (out, in); we pass transposed (in, out) layouts.
    wq = jax.random.normal(kq, (k, k * heads), dtype=jnp.float32) * 0.1
    wk = jax.random.normal(kk_, (k, k * heads), dtype=jnp.float32) * 0.1
    wv = jax.random.normal(kv, (k, k * heads), dtype=jnp.float32) * 0.1
    wu = jax.random.normal(ku, (k * heads, k), dtype=jnp.float32) * 0.1
    bu = jax.random.normal(kb, (k,), dtype=jnp.float32) * 0.1

    # One-time parameter prep (hoisted off the forward path).
    params = prepare_self_attention_params(wq, wk, wv, wu, bu, heads=heads,
                                           compute_dtype=jnp.bfloat16)

    # Forward: bf16 MXU inputs, f32 matmul results / softmax / accumulation.
    x_bf16 = x.astype(jnp.bfloat16)
    out = self_attention_pallas(x_bf16, params)
    out = jax.block_until_ready(out)

    # f32 reference on the same (bf16-quantized) activations.
    ref = self_attention_ref(x_bf16.astype(jnp.float32), wq, wk, wv, wu, bu,
                             heads=heads)
    assert out.shape == (b, t, k)
    err = float(jnp.max(jnp.abs(out.astype(jnp.float32) - ref)))
    assert jnp.allclose(out.astype(jnp.float32), ref, atol=2e-2, rtol=2e-2), \
        f"mismatch vs reference (max abs err {err})"

    print("KERNEL_OK")
</pallas_src>

<mosaic_0001>
module attributes {stable_mosaic.version = 11 : i64} {
  func.func @_self_attention_kernel(%arg0: i32, %arg1: memref<1x8x32xbf16, #tpu.memory_space<vmem>>, %arg2: memref<32x768xbf16, #tpu.memory_space<vmem>>, %arg3: memref<1x32xf32, #tpu.memory_space<vmem>>, %arg4: memref<1x1x256xbf16, #tpu.memory_space<vmem>>) attributes {dimension_semantics = [#tpu.dimension_semantics<parallel>], iteration_bounds = array<i64: 2>, scalar_prefetch = 0 : i64, scratch_operands = 0 : i64, tpu.core_type = #tpu.core_type<tc>, window_params = [{transform_indices = @transform_0, window_bounds = array<i64: 1, 8, 32>}, {pipeline_mode = #tpu.pipeline_mode<synchronous>, transform_indices = @transform_1, window_bounds = array<i64: 32, 768>}, {pipeline_mode = #tpu.pipeline_mode<synchronous>, transform_indices = @transform_2, window_bounds = array<i64: 1, 32>}, {transform_indices = @transform_3, window_bounds = array<i64: 1, 1, 256>}]} {
    %c0 = arith.constant 0 : index
    %c0_0 = arith.constant 0 : index
    %c0_1 = arith.constant 0 : index
    %0 = vector.load %arg1[%c0, %c0_0, %c0_1] : memref<1x8x32xbf16, #tpu.memory_space<vmem>>, vector<1x8x32xbf16>
    %1 = vector.shape_cast %0 : vector<1x8x32xbf16> to vector<8x32xbf16>
    %c0_2 = arith.constant 0 : index
    %c0_3 = arith.constant 0 : index
    %2 = vector.load %arg2[%c0_2, %c0_3] : memref<32x768xbf16, #tpu.memory_space<vmem>>, vector<32x768xbf16>
    %cst = arith.constant dense<0.000000e+00> : vector<8x768xf32>
    %3 = tpu.matmul %1, %2, %cst {dimension_numbers = #tpu.dot_dimension_numbers<[1], [0], [0], [1], [0, 0, 1, 1], [], []>} : vector<8x32xbf16>, vector<32x768xbf16>, vector<8x768xf32> -> vector<8x768xf32>
    %4 = vector.extract_strided_slice %3 {offsets = [0, 0], sizes = [8, 256], strides = [1, 1]} : vector<8x768xf32> to vector<8x256xf32>
    %5 = vector.extract_strided_slice %3 {offsets = [0, 256], sizes = [8, 256], strides = [1, 1]} : vector<8x768xf32> to vector<8x256xf32>
    %6 = vector.extract_strided_slice %3 {offsets = [0, 512], sizes = [8, 256], strides = [1, 1]} : vector<8x768xf32> to vector<8x256xf32>
    %7 = vector.shape_cast %4 : vector<8x256xf32> to vector<1x8x8x32xf32>
    %8 = tpu.transpose %7, [0, 2, 1, 3] : vector<1x8x8x32xf32> -> vector<1x8x8x32xf32>
    %9 = vector.shape_cast %8 : vector<1x8x8x32xf32> to vector<8x8x32xf32>
    %10 = vector.shape_cast %5 : vector<8x256xf32> to vector<1x8x8x32xf32>
    %11 = tpu.transpose %10, [0, 2, 1, 3] : vector<1x8x8x32xf32> -> vector<1x8x8x32xf32>
    %12 = vector.shape_cast %11 : vector<1x8x8x32xf32> to vector<8x8x32xf32>
    %13 = vector.shape_cast %6 : vector<8x256xf32> to vector<1x8x8x32xf32>
    %14 = tpu.transpose %13, [0, 2, 1, 3] : vector<1x8x8x32xf32> -> vector<1x8x8x32xf32>
    %15 = vector.shape_cast %14 : vector<1x8x8x32xf32> to vector<8x8x32xf32>
    "tpu.trace_start"() <{level = 10 : i32, message = "gtd,gsd->gts"}> : () -> ()
    %cst_4 = arith.constant dense<0.000000e+00> : vector<8x8x8xf32>
    %16 = tpu.matmul %9, %12, %cst_4 {dimension_numbers = #tpu.dot_dimension_numbers<[2], [2], [1], [1], [0, 0, 0, 1, 1, 1], [0], [0]>} : vector<8x8x32xf32>, vector<8x8x32xf32>, vector<8x8x8xf32> -> vector<8x8x8xf32>
    "tpu.trace_stop"() : () -> ()
    %cst_5 = arith.constant dense<0xFF800000> : vector<8x8xf32>
    %17 = vector.multi_reduction <maximumf>, %16, %cst_5 [2] : vector<8x8x8xf32> to vector<8x8xf32>
    %18 = vector.shape_cast %17 : vector<8x8xf32> to vector<8x8x1xf32>
    %19 = vector.broadcast %18 : vector<8x8x1xf32> to vector<8x8x8xf32>
    %20 = arith.subf %16, %19 : vector<8x8x8xf32>
    %21 = math.exp %20 : vector<8x8x8xf32>
    %cst_6 = arith.constant dense<0.000000e+00> : vector<8x8xf32>
    %22 = vector.multi_reduction <add>, %21, %cst_6 [2] : vector<8x8x8xf32> to vector<8x8xf32>
    %23 = vector.shape_cast %22 : vector<8x8xf32> to vector<8x8x1xf32>
    %24 = tpu.reciprocal %23 {approx = true} : vector<8x8x1xf32> -> vector<8x8x1xf32>
    %25 = vector.broadcast %24 : vector<8x8x1xf32> to vector<8x8x8xf32>
    %26 = arith.mulf %21, %25 : vector<8x8x8xf32>
    "tpu.trace_start"() <{level = 10 : i32, message = "gts,gsd->gtd"}> : () -> ()
    %cst_7 = arith.constant dense<0.000000e+00> : vector<8x8x32xf32>
    %27 = tpu.matmul %26, %15, %cst_7 {dimension_numbers = #tpu.dot_dimension_numbers<[2], [1], [1], [2], [0, 0, 0, 1, 1, 2], [0], [0]>} : vector<8x8x8xf32>, vector<8x8x32xf32>, vector<8x8x32xf32> -> vector<8x8x32xf32>
    "tpu.trace_stop"() : () -> ()
    %28 = vector.shape_cast %27 : vector<8x8x32xf32> to vector<1x8x8x32xf32>
    %cst_8 = arith.constant dense<0.000000e+00> : vector<1x8x32xf32>
    %29 = vector.multi_reduction <add>, %28, %cst_8 [1] : vector<1x8x8x32xf32> to vector<1x8x32xf32>
    %c0_9 = arith.constant 0 : index
    %c0_10 = arith.constant 0 : index
    %30 = vector.load %arg3[%c0_9, %c0_10] : memref<1x32xf32, #tpu.memory_space<vmem>>, vector<1x32xf32>
    %31 = vector.shape_cast %30 : vector<1x32xf32> to vector<1x1x32xf32>
    %32 = vector.broadcast %31 : vector<1x1x32xf32> to vector<1x8x32xf32>
    %33 = arith.addf %29, %32 : vector<1x8x32xf32>
    %34 = vector.shape_cast %33 : vector<1x8x32xf32> to vector<1x1x256xf32>
    %35 = arith.truncf %34 : vector<1x1x256xf32> to vector<1x1x256xbf16>
    %c0_11 = arith.constant 0 : index
    %c0_12 = arith.constant 0 : index
    %c0_13 = arith.constant 0 : index
    %36 = vector.load %arg4[%c0_11, %c0_12, %c0_13] : memref<1x1x256xbf16, #tpu.memory_space<vmem>>, vector<1x1x256xbf16>
    tpu.vector_store %arg4[%c0_11, %c0_12, %c0_13], %35 {strides = array<i32>} : memref<1x1x256xbf16, #tpu.memory_space<vmem>>, vector<1x1x256xbf16>,
    return
  }
  func.func @transform_0(%arg0: i32) -> (i32, i32, i32) {
    %c0_i32 = arith.constant 0 : i32
    %c0_i32_0 = arith.constant 0 : i32
    %c0_i32_1 = arith.constant 0 : i32
    return %arg0, %c0_i32, %c0_i32_0 : i32, i32, i32
  }
  func.func @transform_1(%arg0: i32) -> (i32, i32) {
    %c0_i32 = arith.constant 0 : i32
    %c0_i32_0 = arith.constant 0 : i32
    %c0_i32_1 = arith.constant 0 : i32
    return %c0_i32, %c0_i32_0 : i32, i32
  }
  func.func @transform_2(%arg0: i32) -> (i32, i32) {
    %c0_i32 = arith.constant 0 : i32
    %c0_i32_0 = arith.constant 0 : i32
    %c0_i32_1 = arith.constant 0 : i32
    return %c0_i32, %c0_i32_0 : i32, i32
  }
  func.func @transform_3(%arg0: i32) -> (i32, i32, i32) {
    %c0_i32 = arith.constant 0 : i32
    %c0_i32_0 = arith.constant 0 : i32
    %c0_i32_1 = arith.constant 0 : i32
    return %arg0, %c0_i32, %c0_i32_0 : i32, i32, i32
  }
}

</mosaic_0001>

<bundles_post_ra>
// kernel: tpu_custom_call.1
= control target key start
LH: loop header
LB: loop body
LE: loop exit
PB: predicated region body
PF: predicated region fallthrough
CT: control target
= control target key end

     0   :  { %8 = vsyncpa [#allocation3], 0  ;;  %s3708_s0 = inlined_call_operand.hbm [shape: bf16[2,8,32], index: 0, kind: input, shape index: {}]   ;;  %s3709_s1 = inlined_call_operand.hbm [shape: bf16[32,768], index: 1, kind: input, shape index: {}]   ;;  %s3710_s2 = inlined_call_operand.vmem [shape: f32[1,32], index: 2, kind: input, shape index: {}]   ;;  %s3711_s3 = inlined_call_operand.vmem [shape: bf16[2,1,256], index: 3, kind: output, shape index: {}]  }
   0x1   :  { %10 = vsyncpa [#allocation3 + $0x1], 0 }
   0x2   :  { %11 = vsyncpa [#allocation5], 0  ;;  %s3214_s12 = smov 0   ;;  %s3216_s13 = smov 0  }
   0x3   :  { %s3218_s14 = smov 0   ;;  %s3220_s15 = smov 0  }
   0x4 LB: > { %s3233_s16 = sadd.s32 4294967295, %s3179_s15   ;;  %p37_p0 = scmp.ne.s32.totalorder %s3171_s13, %s3167_s12  ;;  %s3179_s15 = sphi %s3220_s15, %s3726_s15   ;;  %s3175_s14 = sphi %s3218_s14, %s3725_s14   ;;  %s3171_s13 = sphi %s3216_s13, %s3724_s13   ;;  %s3167_s12 = sphi %s3214_s12, %s3723_s12  }
   0x5   : > { %p3712_p1 = scmp.eq.s32.totalorder %s3233_s16, 0  ;;  %p2769_p2 = scmp.ge.s32.totalorder %s3179_s15, 1 }
   0x6   : > { %p116_p3 = scmp.lt.s32.totalorder %s3179_s15, 3  ;;  %s3181_s19 = smov [#allocation4]  }
   0x7   : > { %p3241_p4 = por %p3712_p1, %p37_p0  ;;  %s128_s20 = sshll.u32 %s3181_s19, 4  ;;  %s129_s20 = int_to_ptr.vmem [resolvable:$true] %s128_s20 }
   0x8   : > { %p3245_p5 = pnand %p2769_p2, %p116_p3  ;;  %s3258_s22 = sadd.s32 1, %s3179_s15  }
   0x9   : > { %s3715_s17 = scalar_select %p3241_p4, 1, 0 }
   0xa   : > { %s3716_s18 = scalar_select %p3245_p5, 1, 0 }
   0xb   : > { %p2963_p6 = pneg %p3245_p5  ;;  %s24_s23 = sadd.s32 1, %s3175_s14 }
   0xc   : > { %s21_s24 = ssub.s32 %s3179_s15, %s3258_s22  ;;  %s3083_s27 = scalar_lea.hbm %s3709_s1, 1536 }
   0xd   : > { %p3253_p7 = pnand %p2963_p6, %p3712_p1  ;;  %p3084_p8 = scmp.ne.s32.totalorder %s3709_s1, %s3083_s27 }
   0xe   : > { %p3090_p12 = scmp.lt.u32.totalorder %s3083_s27, %s3709_s1 }
   0xf   : > { %p3085_p9 = pneg %p3253_p7 }
  0x11   : > { %p3086_p10 = pnand %p3085_p9, %p3084_p8 }
  0x13   : > { %p3087_p11 = pneg %p3086_p10 }
  0x15   : > { %p3092_p13 = pnand %p3090_p12, %p3087_p11 }
  0x17   : > { %3095 = shalt.err (!%p3092_p13)
}
  0x18   : > { %s3096_s5 = scalar_lea.vmem %s129_s20, 1536  ;;  %p3104_p6 = scmp.lt.s32.totalorder %s129_s20, %s129_s20 }
  0x19   : > { %p3097_p0 = scmp.ne.s32.totalorder %s129_s20, %s3096_s5  ;;  %p3105_p1 = scmp.lt.s32.totalorder %s3096_s5, %s3096_s5 }
  0x1b   : > { %p3099_p2 = pnand %p3097_p0, %p3085_p9  ;;  %p3106_p4 = por %p3105_p1, %p3104_p6 }
  0x1d   : > { %p3100_p3 = pneg %p3099_p2 }
  0x1f   : > { %p3107_p5 = pnand %p3106_p4, %p3100_p3 }
  0x21   : > { %3110 = shalt.err (!%p3107_p5)
}
  0x22   : > { %s3182_s6 = smov 384   ;;  %s3183_s7 = smov 24  }
  0x23   : > { %2966 = dma.hbm_to_vmem [thread:$0]  (!%p3253_p7), %s3709_s1, 1536, %s129_s20, [#allocation5], %s3182_s6, %s3182_s6, %s3183_s7  }
  0x24   : > { %p22_p8 = scmp.eq.s32.totalorder %s21_s24, 0  ;;  %p31_p9 = scmp.ne.s32.totalorder %s3175_s14, %s3171_s13 }
  0x25   : > { %p32_p1 = scmp.eq.s32.totalorder %s3179_s15, 0  ;;  %p2972_p4 = scmp.lt.s32.totalorder %s3179_s15, 2 }
  0x26   : > { %s3284_s10 = scalar_select %p22_p8, %s3175_s14, %s24_s23  }
  0x27   : > { %p33_p5 = por %p32_p1, %p31_p9  ;;  %s145_s11 = sand.u32 1, %s3175_s14  }
  0x28   : > { %s2772_s12 = sshll.u32 %s145_s11, 2  ;;  %s2773_s19 = sshll.u32 %s3179_s15, 6 }
  0x29   : > { %s3291_s27 = scalar_lea.hbm %s3708_s0, %s2773_s19  ;;  %s149_s20 = scalar_lea.vmem [#allocation2], %s2772_s12 }
  0x2a   : > { %s156_s21 = sshll.u32 %s149_s20, 4  ;;  %p3295_p7 = pnand %p2972_p4, %p33_p5  ;;  %s3293_s21 = int_to_ptr.vmem [resolvable:$true] %s156_s21 }
  0x2b   : > { %s146_s15 = scalar_lea.sflag [#allocation3], %s145_s11  ;;  %s3111_s24 = scalar_lea.hbm %s3291_s27, 64 }
  0x2c   : > { %p3112_p10 = scmp.ne.s32.totalorder %s3291_s27, %s3111_s24  ;;  %p3113_p11 = pneg %p3295_p7 }
  0x2d   : > { %s3116_s30 = scalar_lea.hbm %s3708_s0, 128  ;;  %p3117_p0 = scmp.lt.u32.totalorder %s3291_s27, %s3708_s0 }
  0x2e   : > { %p3114_p12 = pnand %p3113_p11, %p3112_p10  ;;  %p3118_p2 = scmp.lt.u32.totalorder %s3116_s30, %s3111_s24 }
  0x2f   : > { %p3120_p6 = scmp.lt.u32.totalorder %s3111_s24, %s3291_s27 }
  0x30   : > { %p3115_p13 = pneg %p3114_p12  ;;  %p3119_p3 = por %p3118_p2, %p3117_p0 }
  0x32   : > { %p3121_p8 = por %p3120_p6, %p3119_p3 }
  0x34   : > { %p3122_p9 = pnand %p3121_p8, %p3115_p13 }
  0x36   : > { %3125 = shalt.err (!%p3122_p9)
}
  0x37   : > { %s3126_s6 = scalar_lea.vmem %s3293_s21, 64  ;;  %s3184_s7 = smov [#allocation2]  }
  0x38   : > { %p3127_p1 = scmp.ne.s32.totalorder %s3293_s21, %s3126_s6  ;;  %s3131_s8 = sshll.u32 %s3184_s7, 4  ;;  %s3132_s8 = int_to_ptr.vmem [resolvable:$false] %s3131_s8 }
  0x39   : > { %s3133_s9 = scalar_lea.vmem %s3132_s8, 128  ;;  %p3134_p10 = scmp.lt.s32.totalorder %s3293_s21, %s3132_s8 }
  0x3a   : > { %p3129_p4 = pnand %p3127_p1, %p3113_p11  ;;  %p3135_p12 = scmp.lt.s32.totalorder %s3133_s9, %s3126_s6 }
  0x3c   : > { %p3130_p5 = pneg %p3129_p4  ;;  %p3136_p0 = por %p3135_p12, %p3134_p10 }
  0x3e   : > { %p3137_p2 = pnand %p3136_p0, %p3130_p5 }
  0x40   : > { %3140 = shalt.err (!%p3137_p2)
}
  0x41   : > { %2970 = dma.hbm_to_vmem [thread:$0]  (!%p3295_p7), %s3291_s27, 64, %s3293_s21, %s146_s15  }
  0x42   : > { %p3719_p13 = scmp.ne.s32.totalorder %s3716_s18, 0 }
  0x43   : > { %s167_s11 = sand.u32 (!%p3719_p13), 1, %s3171_s13   ;;  %p3720_p11 = scmp.ne.s32.totalorder (!%p3719_p13), %s3715_s17, 0 }
  0x44   : > { %165 = sbr.rel (%p3719_p13) target bundleno = 1416 (0x588), region = 32  ;;  %s2775_s12 = sshll.u32 (!%p3719_p13), %s167_s11, 2 }
  0x45   : > { %s168_s19 = scalar_lea.sflag (!%p3719_p13), [#allocation3], %s167_s11  ;;  %s171_s25 = scalar_lea.vmem (!%p3719_p13), [#allocation2], %s2775_s12 }
  0x4b   : > { %3158 = dma.done.wait (%p3720_p11), %s168_s19, 64  }
  0x4c   : > { %3160 = vsyncadd (%p3720_p11), %s168_s19, 4294967232  ;;  %p3721_p3 = scmp.eq.s32.totalorder %s3233_s16, 0 }
  0x4e   : > { %3162 = dma.done.wait (%p3721_p3), [#allocation5], 1536   ;;  %p3722_p6 = pmov %p3721_p3 }
  0x4f   : > { %v3185_v0 = vmov 0   ;;  %v3033_v1 = vld [vmem:[#allocation4 + $0xc] ss:$24 sps:$4 sm:$0xff]   ;;  %v3037_v3 = vld [vmem:[#allocation4 + $0x8] ss:$24 sps:$4 sm:$0xff]   ;;  %vm275_vm0 = vcmask 261120   ;;  %v427_v25 = vlaneseq }
  0x50   : > { %3164 = vsyncadd (%p3722_p6), [#allocation5], 4294965760  ;;  %352 = vmatprep.mubr.bf16.mxu1 %v3185_v0  ;;  %311 = vmatprep.mubr.bf16.mxu0 %v3185_v0  ;;  %v3035_v2 = vld [vmem:[#allocation4 + $0x4] ss:$24 sps:$4 sm:$0xff]   ;;  %v3038_v4 = vld [vmem:[#allocation4] ss:$24 sps:$4 sm:$0xff]  }
  0x51   : > { %320 = vmatprep.subr.bf16.mxu1 %v3033_v1  ;;  %279 = vmatprep.subr.bf16.mxu0 %v3035_v2  ;;  %v3039_v5 = vld [vmem:[#allocation4 + $0x3c] ss:$24 sps:$4 sm:$0xff]   ;;  %v3043_v7 = vld [vmem:[#allocation4 + $0x38] ss:$24 sps:$4 sm:$0xff]   ;;  %s3186_s17 = smov 32   ;;  %s3187_s18 = smov 96  }
  0x52   : > { %321 = vmatpush1.bf16.msra.mxu1 %v3037_v3  ;;  %280 = vmatpush1.bf16.msra.mxu0 %v3038_v4  ;;  %v3041_v6 = vld [vmem:[#allocation4 + $0x34] ss:$24 sps:$4 sm:$0xff]   ;;  %v3044_v8 = vld [vmem:[#allocation4 + $0x30] ss:$24 sps:$4 sm:$0xff]   ;;  %v202_v9 = vld [vmem:[%s171_s25] sm:$0xf] }
  0x53   : > { %322 = vmatprep.subr.bf16.mxu1 %v3039_v5  ;;  %281 = vmatprep.subr.bf16.mxu0 %v3041_v6  ;;  %v3045_v10 = vld [vmem:[#allocation4 + $0x10] ss:$24 sps:$4 sm:$0xff]   ;;  %v3047_v11 = vld [vmem:[#allocation4 + $0x14] ss:$24 sps:$4 sm:$0xff]   ;;  %v3050_v12 = vld [vmem:[#allocation4 + $0x44] ss:$24 sps:$4 sm:$0xff]  }
  0x54   : > { %v3048_v13 = vld [vmem:[#allocation4 + $0x40] ss:$24 sps:$4 sm:$0xff]   ;;  %s3188_s26 = smov 64   ;;  %v3189_v22 = vmov 0.0   ;;  %vm3190_vm1 = vmmov 0   ;;  %v3371_v29 = vshrl.u32 %v427_v25, 7 }
  0x55   : > { %v3191_v23 = vmov 1983009808   ;;  %v3192_v26 = vmov 1934713408   ;;  %vm1886_vm2 = vcmask 64512   ;;  %p197_p7 = scmp.lt.s32.totalorder %s3233_s16, 1 }
  0x56   : > { %323 = vmatpush1.bf16.msra.mxu1 %v3043_v7  ;;  %282 = vmatpush1.bf16.msra.mxu0 %v3044_v8  ;;  %v425_v24 = vunpack.c.l.s4 %v3191_v23  ;;  %v489_v27 = vunpack.c.l.s4 %v3192_v26  ;;  %vm2656_vm3 = vcmask 523264   ;;  %vm2658_vm4 = vcmask 785408  }
  0x57   : > { %361 = vmatprep.subr.bf16.mxu0 %v3047_v11  ;;  %2877 = vmatprep.subr.mxu1 %v3189_v22  ;;  %s3728_s16 = smov (!%p197_p7, %s3233_s16), 1  ;;  %vm2683_vm5 = vcmask 1040384   ;;  %vm2684_vm6 = vsmask.f32 256  ;;  %vm2686_vm7 = vcmask 1041409  }
  0x58   : > { %v426_v28 = vunpack.c.0.s8 %v425_v24  ;;  %v490_v34 = vunpack.c.0.s8 %v489_v27  ;;  %s2777_s21 = sshll.u32 %s3728_s16, 1  ;;  %vm2687_vm8 = vsmask.f32 1280  ;;  %vm2685_vm9 = vmand %vm2683_vm5, %vm2684_vm6 }
  0x59   : > { %2791 = vmatmul.mubr.msk.bf16.vlgmr.msra.gmra.mrb[0].mxu1 %vm275_vm0, %v202_v9  ;;  %2790 = vmatmul.mubr.msk.bf16.vlgmr.msra.gmra.mrb[0].mxu0 %vm275_vm0, %v202_v9  ;;  %s200_s24 = scalar_lea.vmem %s3711_s3, %s2777_s21  ;;  %vm2688_vm10 = vmand %vm2686_vm7, %vm2687_vm8 }
  0x5a   : > { %393 = vmatprep.mubr.bf16.mxu0 %v3185_v0  ;;  %362 = vmatpush1.bf16.msra.mxu0 %v3045_v10  ;;  %v3380_v36 = vsub.s32 %v426_v28, %v3371_v29  ;;  %v3383_v44 = vsub.s32 %v490_v34, %v3371_v29  ;;  %vm2689_vm11 = vmor %vm2688_vm10, %vm2685_vm9 }
  0x5b   : > { %363 = vmatprep.subr.bf16.mxu0 %v3050_v12  ;;  %2879 = vmatprep.mubr.msk.f32.mxu1 %vm3190_vm1, %v3189_v22 }
  0x5e   : > { %364 = vmatpush1.bf16.msra.mxu0 %v3048_v13 }
  0x5f   : > { %2887 = vmatprep.subr.mxu0 %v3189_v22 }
  0x61   : > { %2792 = vmatmul.mubr.msk.bf16.vlgmr.msra.gmra.mrb[4].mxu0 %vm275_vm0, %v202_v9 }
  0x62   : > { %2889 = vmatprep.mubr.msk.f32.mxu0 %vm3190_vm1, %v3189_v22 }
 0x12c   : > { %v354_v14 = vpop.f32.mrb[0].mxu1  ;;  %v3338_v15 = vpop.f32.mrb[0].mxu0 }
 0x12d   : > { %701 = vrot.lane.b32.xlu1 %v354_v14, %s3186_s17  ;;  %695 = vrot.lane.b32.xlu0 %v354_v14, %s3187_s18  ;;  %v3342_v16 = vpop.f32.mrb[1].mxu1  ;;  %v3344_v17 = vpop.f32.mrb[1].mxu0 }
 0x12e   : > { %v358_v18 = vpop.f32.mrb[2].mxu1  ;;  %v317_v19 = vpop.f32.mrb[2].mxu0 }
 0x12f   : > { %v359_v20 = vpop.f32.mrb[3].mxu1  ;;  %v318_v21 = vpop.f32.mrb[3].mxu0 }
 0x131   : > { %698 = vrot.lane.b32.xlu0 %v354_v14, %s3188_s26  ;;  %403 = vrot.lane.b32.xlu1 %v3338_v15, %s3187_s18 }
 0x134   : > { %v3373_v30 = vpop.f32.mrb[4].mxu0 }
 0x135   : > { %406 = vrot.lane.b32.xlu0 %v3338_v15, %s3188_s26  ;;  %409 = vrot.lane.b32.xlu1 %v3338_v15, %s3186_s17  ;;  %v3377_v33 = vpop.f32.mrb[5].mxu0 }
 0x136   : > { %v399_v35 = vpop.f32.mrb[6].mxu0 }
 0x137   : > { %v400_v39 = vpop.f32.mrb[7].mxu0 }
 0x139   : > { %705 = vrot.lane.b32.xlu0 %v3342_v16, %s3187_s18  ;;  %708 = vrot.lane.b32.xlu1 %v3342_v16, %s3188_s26 }
 0x13d   : > { %711 = vrot.lane.b32.xlu0 %v3342_v16, %s3186_s17  ;;  %413 = vrot.lane.b32.xlu1 %v3344_v17, %s3187_s18 }
 0x141   : > { %416 = vrot.lane.b32.xlu0 %v3344_v17, %s3188_s26  ;;  %419 = vrot.lane.b32.xlu1 %v3344_v17, %s3186_s17 }
 0x145   : > { %987 = vrot.lane.b32.xlu1 %v3373_v30, %s3187_s18 }
 0x19f   : > { %v702_v31 = vpop.permute.xlu1 %701  ;;  %v696_v32 = vpop.permute.xlu0 %695 }
 0x1a0   : > { %v730_v37 = vcombine.low %v696_v32, %v702_v31  ;;  %v731_v38 = vcombine.high %v696_v32, %v702_v31 }
 0x1a2   : > { %v738_v45 = vrot.slane %v730_v37, %v3380_v36  ;;  %v745_v46 = vrot.slane %v731_v38, %v3380_v36 }
 0x1a3   : > { %v699_v40 = vpop.permute.xlu0 %698  ;;  %v404_v41 = vpop.permute.xlu1 %403 }
 0x1a4   : > { %v714_v42 = vcombine.low %v354_v14, %v699_v40  ;;  %v715_v43 = vcombine.high %v354_v14, %v699_v40 }
 0x1a6   : > { %v722_v47 = vrot.slane %v714_v42, %v3380_v36  ;;  %v729_v48 = vrot.slane %v715_v43, %v3380_v36 }
 0x1a7   : > { %v407_v49 = vpop.permute.xlu0 %406  ;;  %v410_v50 = vpop.permute.xlu1 %409 }
 0x1a8   : > { %v778_v51 = vcombine.low %v722_v47, %v738_v45  ;;  %v779_v52 = vcombine.high %v722_v47, %v738_v45  ;;  %v794_v53 = vcombine.low %v729_v48, %v745_v46  ;;  %v795_v54 = vcombine.high %v729_v48, %v745_v46 }
 0x1a9   : > { %v422_v55 = vcombine.low %v3338_v15, %v407_v49  ;;  %v423_v56 = vcombine.high %v3338_v15, %v407_v49  ;;  %v438_v57 = vcombine.low %v404_v41, %v410_v50  ;;  %v439_v58 = vcombine.high %v404_v41, %v410_v50 }
 0x1aa   : > { %v786_v59 = vrot.slane %v778_v51, %v3383_v44  ;;  %v793_v60 = vrot.slane %v779_v52, %v3383_v44  ;;  %v802_v61 = vrot.slane %v794_v53, %v3383_v44  ;;  %v809_v62 = vrot.slane %v795_v54, %v3383_v44 }
 0x1ab   : > { %v430_v63 = vrot.slane %v422_v55, %v3380_v36  ;;  %v437_v0 = vrot.slane %v423_v56, %v3380_v36  ;;  %v446_v1 = vrot.slane %v438_v57, %v3380_v36  ;;  %v453_v2 = vrot.slane %v439_v58, %v3380_v36  ;;  %v706_v3 = vpop.permute.xlu0 %705  ;;  %v709_v4 = vpop.permute.xlu1 %708 }
 0x1ac   : > { %v2801_v5 = vcombine.low %v786_v59, %v793_v60  ;;  %v2803_v6 = vcombine.high %v786_v59, %v793_v60  ;;  %v2805_v7 = vcombine.low %v802_v61, %v809_v62  ;;  %v2807_v8 = vcombine.high %v802_v61, %v809_v62 }
 0x1ad   : > { %v486_v9 = vcombine.low %v430_v63, %v446_v1  ;;  %v487_v10 = vcombine.high %v430_v63, %v446_v1  ;;  %v502_v11 = vcombine.low %v437_v0, %v453_v2  ;;  %v503_v12 = vcombine.high %v437_v0, %v453_v2 }
 0x1ae   : > { %v3400_v13 = vrot.slane %v2801_v5, %v3380_v36  ;;  %v3403_v14 = vrot.slane %v2803_v6, %v3380_v36  ;;  %v3406_v15 = vrot.slane %v2805_v7, %v3380_v36  ;;  %v3409_v18 = vrot.slane %v2807_v8, %v3380_v36 }
 0x1af   : > { %v494_v19 = vrot.slane %v486_v9, %v3383_v44  ;;  %v501_v20 = vrot.slane %v487_v10, %v3383_v44  ;;  %v510_v21 = vrot.slane %v502_v11, %v3383_v44  ;;  %v517_v23 = vrot.slane %v503_v12, %v3383_v44  ;;  %v712_v24 = vpop.permute.xlu0 %711  ;;  %v414_v25 = vpop.permute.xlu1 %413 }
 0x1b0   : > { %v914_v26 = vcombine.low %v3400_v13, %v3403_v14  ;;  %v915_v27 = vcombine.high %v3400_v13, %v3403_v14  ;;  %v746_v35 = vcombine.low %v3342_v16, %v709_v4  ;;  %v747_v37 = vcombine.high %v3342_v16, %v709_v4 }
 0x1b1   : > { %v2793_v28 = vcombine.low %v494_v19, %v501_v20  ;;  %v2795_v31 = vcombine.high %v494_v19, %v501_v20  ;;  %v2797_v32 = vcombine.low %v510_v21, %v517_v23  ;;  %v2799_v34 = vcombine.high %v510_v21, %v517_v23 }
 0x1b2   : > { %v762_v38 = vcombine.low %v706_v3, %v712_v24  ;;  %v763_v39 = vcombine.high %v706_v3, %v712_v24  ;;  %v946_v40 = vcombine.low %v3406_v15, %v3409_v18  ;;  %v947_v41 = vcombine.high %v3406_v15, %v3409_v18 }
 0x1b3   : > { %v3426_v42 = vrot.slane %v2793_v28, %v3380_v36  ;;  %v3429_v43 = vrot.slane %v2795_v31, %v3380_v36  ;;  %v754_v45 = vrot.slane %v746_v35, %v3380_v36  ;;  %v761_v46 = vrot.slane %v747_v37, %v3380_v36  ;;  %v417_v48 = vpop.permute.xlu0 %416  ;;  %v420_v49 = vpop.permute.xlu1 %419 }
 0x1b4   : > { %v770_v16 = vrot.slane %v762_v38, %v3380_v36  ;;  %v777_v47 = vrot.slane %v763_v39, %v3380_v36  ;;  %v3436_v50 = vrot.slane %v2797_v32, %v3380_v36  ;;  %v3439_v51 = vrot.slane %v2799_v34, %v3380_v36 }
 0x1b5   : > { %v622_v52 = vcombine.low %v3426_v42, %v3429_v43  ;;  %v623_v53 = vcombine.high %v3426_v42, %v3429_v43  ;;  %v454_v58 = vcombine.low %v3344_v17, %v417_v48  ;;  %v455_v59 = vcombine.high %v3344_v17, %v417_v48 }
 0x1b6   : > { %v810_v54 = vcombine.low %v754_v45, %v770_v16  ;;  %v811_v55 = vcombine.high %v754_v45, %v770_v16  ;;  %v826_v56 = vcombine.low %v761_v46, %v777_v47  ;;  %v827_v57 = vcombine.high %v761_v46, %v777_v47 }
 0x1b7   : > { %v470_v60 = vcombine.low %v414_v25, %v420_v49  ;;  %v471_v61 = vcombine.high %v414_v25, %v420_v49  ;;  %v462_v2 = vrot.slane %v454_v58, %v3380_v36  ;;  %v469_v3 = vrot.slane %v455_v59, %v3380_v36 }
 0x1b8   : > { %v818_v62 = vrot.slane %v810_v54, %v3383_v44  ;;  %v825_v63 = vrot.slane %v811_v55, %v3383_v44  ;;  %v834_v0 = vrot.slane %v826_v56, %v3383_v44  ;;  %v841_v1 = vrot.slane %v827_v57, %v3383_v44 }
 0x1b9   : > { %v478_v4 = vrot.slane %v470_v60, %v3380_v36  ;;  %v485_v5 = vrot.slane %v471_v61, %v3380_v36  ;;  %v654_v28 = vcombine.low %v3436_v50, %v3439_v51  ;;  %v655_v31 = vcombine.high %v3436_v50, %v3439_v51 }
 0x1ba   : > { %v2802_v6 = vcombine.low %v818_v62, %v825_v63  ;;  %v2804_v17 = vcombine.high %v818_v62, %v825_v63  ;;  %v2806_v7 = vcombine.low %v834_v0, %v841_v1  ;;  %v2808_v8 = vcombine.high %v834_v0, %v841_v1 }
 0x1bb   : > { %v518_v9 = vcombine.low %v462_v2, %v478_v4  ;;  %v519_v10 = vcombine.high %v462_v2, %v478_v4  ;;  %v534_v11 = vcombine.low %v469_v3, %v485_v5  ;;  %v535_v12 = vcombine.high %v469_v3, %v485_v5 }
 0x1bc   : > { %v865_v15 = vrot.slane %v2802_v6, %v3380_v36  ;;  %v881_v18 = vrot.slane %v2804_v17, %v3380_v36  ;;  %v897_v19 = vrot.slane %v2806_v7, %v3380_v36  ;;  %v913_v20 = vrot.slane %v2808_v8, %v3380_v36 }
 0x1bd   : > { %v526_v21 = vrot.slane %v518_v9, %v3383_v44  ;;  %v533_v23 = vrot.slane %v519_v10, %v3383_v44  ;;  %v542_v24 = vrot.slane %v534_v11, %v3383_v44  ;;  %v549_v25 = vrot.slane %v535_v12, %v3383_v44 }
 0x1be   : > { %v930_v32 = vcombine.low %v865_v15, %v881_v18  ;;  %v962_v34 = vcombine.low %v897_v19, %v913_v20  ;;  %v922_v42 = vrot.slane %v914_v26, %v3383_v44  ;;  %v954_v43 = vrot.slane %v946_v40, %v3383_v44 }
 0x1bf   : > { %v2794_v35 = vcombine.low %v526_v21, %v533_v23  ;;  %v2796_v37 = vcombine.high %v526_v21, %v533_v23  ;;  %v2798_v38 = vcombine.low %v542_v24, %v549_v25  ;;  %v2800_v39 = vcombine.high %v542_v24, %v549_v25 }
 0x1c0   : > { %v929_v45 = vrot.slane %v915_v27, %v3383_v44  ;;  %v961_v46 = vrot.slane %v947_v41, %v3383_v44  ;;  %v978_v50 = vcombine.low %v922_v42, %v954_v43  ;;  %v630_v26 = vrot.slane %v622_v52, %v3383_v44 }
 0x1c1   : > { %v573_v16 = vrot.slane %v2794_v35, %v3380_v36  ;;  %v589_v47 = vrot.slane %v2796_v37, %v3380_v36  ;;  %v605_v48 = vrot.slane %v2798_v38, %v3380_v36  ;;  %v621_v49 = vrot.slane %v2800_v39, %v3380_v36 }
 0x1c2   : > { %v980_v51 = vcombine.low %v929_v45, %v961_v46  ;;  %v662_v40 = vrot.slane %v654_v28, %v3383_v44  ;;  %v931_v54 = vcombine.high %v865_v15, %v881_v18  ;;  %v963_v14 = vcombine.high %v897_v19, %v913_v20  ;;  %2878 = vmatpush3.xpose.msk.msra.mxu1 %vm275_vm0, %v978_v50  ;;  %v988_v50 = vpop.permute.xlu1 %987 }
 0x1c3   : > { %v638_v55 = vcombine.low %v573_v16, %v589_v47  ;;  %v670_v13 = vcombine.low %v605_v48, %v621_v49  ;;  %v637_v41 = vrot.slane %v623_v53, %v3383_v44  ;;  %2882 = vmatprep.subr.mxu1 %v3189_v22  ;;  %v979_v56 = vcombine.high %v922_v42, %v954_v43 }
 0x1c4   : > { %2888 = vmatpush3.xpose.msk.msra.mxu0 %vm275_vm0, %v980_v51  ;;  %v686_v27 = vcombine.low %v630_v26, %v662_v40  ;;  %v669_v57 = vrot.slane %v655_v31, %v3383_v44  ;;  %v938_v52 = vrot.slane %v930_v32, %v3383_v44  ;;  %v970_v58 = vrot.slane %v962_v34, %v3383_v44 }
 0x1c5   : > { %2897 = vmatprep.subr.mxu0 %v3189_v22  ;;  %v646_v59 = vrot.slane %v638_v55, %v3383_v44  ;;  %v678_v60 = vrot.slane %v670_v13, %v3383_v44  ;;  %v639_v61 = vcombine.high %v573_v16, %v589_v47  ;;  %v671_v62 = vcombine.high %v605_v48, %v621_v49 }
 0x1c6   : > { %2880 = vmatmul.mubr.msk.f32.vlgmr.msra.gmra.mrb[4].mxu1 %vm275_vm0, %v686_v27  ;;  %v688_v53 = vcombine.low %v637_v41, %v669_v57  ;;  %v982_v63 = vcombine.low %v938_v52, %v970_v58  ;;  %v945_v0 = vrot.slane %v931_v54, %v3383_v44  ;;  %v977_v1 = vrot.slane %v963_v14, %v3383_v44 }
 0x1c7   : > { %2883 = vmatpush3.xpose.msk.msra.mxu1 %vm275_vm0, %v979_v56  ;;  %2884 = vmatprep.mubr.msk.f32.mxu1 %vm3190_vm1, %v3189_v22  ;;  %v687_v2 = vcombine.high %v630_v26, %v662_v40  ;;  %v690_v3 = vcombine.low %v646_v59, %v678_v60  ;;  %v981_v4 = vcombine.high %v929_v45, %v961_v46 }
 0x1c8   : > { %2890 = vmatmul.mubr.msk.f32.vlgmr.msra.gmra.mrb[8].mxu0 %vm275_vm0, %v688_v53  ;;  %2892 = vmatprep.subr.mxu1 %v3189_v22  ;;  %v653_v5 = vrot.slane %v639_v61, %v3383_v44  ;;  %v685_v6 = vrot.slane %v671_v62, %v3383_v44  ;;  %v983_v17 = vcombine.high %v938_v52, %v970_v58 }
 0x1c9   : > { %2898 = vmatpush3.xpose.msk.msra.mxu0 %vm275_vm0, %v982_v63  ;;  %2899 = vmatprep.mubr.msk.f32.mxu0 %vm3190_vm1, %v3189_v22  ;;  %v984_v7 = vcombine.low %v945_v0, %v977_v1  ;;  %v689_v8 = vcombine.high %v637_v41, %v669_v57  ;;  %v691_v9 = vcombine.high %v646_v59, %v678_v60 }
 0x1ca   : > { %2885 = vmatmul.mubr.msk.f32.vlgmr.msra.gmra.mrb[6].mxu1 %vm275_vm0, %v687_v2  ;;  %2907 = vmatprep.subr.mxu0 %v3189_v22  ;;  %v692_v10 = vcombine.low %v653_v5, %v685_v6  ;;  %v985_v11 = vcombine.high %v945_v0, %v977_v1  ;;  %v693_v12 = vcombine.high %v653_v5, %v685_v6 }
 0x1cb   : > { %2893 = vmatpush3.xpose.msk.msra.mxu1 %vm275_vm0, %v981_v4  ;;  %2894 = vmatprep.mubr.msk.f32.mxu1 %vm3190_vm1, %v3189_v22 }
 0x1cc   : > { %2902 = vmatprep.subr.mxu1 %v3189_v22  ;;  %2900 = vmatmul.mubr.msk.f32.vlgmr.msra.gmra.mrb[10].mxu0 %vm275_vm0, %v690_v3 }
 0x1cd   : > { %2908 = vmatpush3.xpose.msk.msra.mxu0 %vm275_vm0, %v984_v7  ;;  %2909 = vmatprep.mubr.msk.f32.mxu0 %vm3190_vm1, %v3189_v22 }
 0x1ce   : > { %2895 = vmatmul.mubr.msk.f32.vlgmr.msra.gmra.mrb[8].mxu1 %vm275_vm0, %v689_v8  ;;  %2917 = vmatprep.subr.mxu0 %v3189_v22 }
 0x1cf   : > { %2903 = vmatpush3.xpose.msk.msra.mxu1 %vm275_vm0, %v983_v17  ;;  %2904 = vmatprep.mubr.msk.f32.mxu1 %vm3190_vm1, %v3189_v22 }
 0x1d0   : > { %2912 = vmatprep.subr.mxu1 %v3189_v22  ;;  %2910 = vmatmul.mubr.msk.f32.vlgmr.msra.gmra.mrb[12].mxu0 %vm275_vm0, %v692_v10 }
 0x1d1   : > { %2919 = vmatprep.mubr.msk.f32.mxu0 %vm3190_vm1, %v3189_v22 }
 0x1d2   : > { %2905 = vmatmul.mubr.msk.f32.vlgmr.msra.gmra.mrb[10].mxu1 %vm275_vm0, %v691_v9 }
 0x1d3   : > { %2913 = vmatpush3.xpose.msk.msra.mxu1 %vm275_vm0, %v985_v11  ;;  %2914 = vmatprep.mubr.msk.f32.mxu1 %vm3190_vm1, %v3189_v22 }
 0x1d4   : > { %2922 = vmatprep.subr.mxu1 %v3189_v22 }
 0x1d6   : > { %2915 = vmatmul.mubr.msk.f32.vlgmr.msra.gmra.mrb[12].mxu1 %vm275_vm0, %v693_v12 }
 0x1d7   : > { %2924 = vmatprep.mubr.msk.f32.mxu1 %vm3190_vm1, %v3189_v22 }
 0x299   : > { %v1350_v15 = vpop.f32.mrb[4].mxu1 }
 0x29a   : > { %v2881_v18 = vpop.f32.mrb[5].mxu1  ;;  %v1887_v19 = vsel %vm1886_vm2, %v1350_v15, -inf }
 0x29b   : > { %v1502_v20 = vpop.f32.mrb[8].mxu0  ;;  %1888 = vmax.xlane.f32.xlu0 %v1887_v19 }
 0x29c   : > { %v2891_v21 = vpop.f32.mrb[9].mxu0  ;;  %v1893_v28 = vsel %vm1886_vm2, %v1502_v20, -inf }
 0x29d   : > { %v1426_v23 = vpop.f32.mrb[6].mxu1 }
 0x29e   : > { %v2886_v24 = vpop.f32.mrb[7].mxu1  ;;  %v1890_v25 = vsel %vm1886_vm2, %v1426_v23, -inf }
 0x29f   : > { %1891 = vmax.xlane.f32.xlu1 %v1890_v25  ;;  %1894 = vmax.xlane.f32.xlu0 %v1893_v28  ;;  %v1654_v31 = vpop.f32.mrb[10].mxu0 }
 0x2a0   : > { %v2901_v32 = vpop.f32.mrb[11].mxu0  ;;  %v1899_v34 = vsel %vm1886_vm2, %v1654_v31, -inf }
 0x2a1   : > { %v1578_v35 = vpop.f32.mrb[8].mxu1 }
 0x2a2   : > { %v2896_v37 = vpop.f32.mrb[9].mxu1  ;;  %v1896_v38 = vsel %vm1886_vm2, %v1578_v35, -inf }
 0x2a3   : > { %1897 = vmax.xlane.f32.xlu0 %v1896_v38  ;;  %1900 = vmax.xlane.f32.xlu1 %v1899_v34  ;;  %v1806_v39 = vpop.f32.mrb[12].mxu0 }
 0x2a4   : > { %v2911_v42 = vpop.f32.mrb[13].mxu0  ;;  %v1905_v43 = vsel %vm1886_vm2, %v1806_v39, -inf }
 0x2a5   : > { %v1730_v45 = vpop.f32.mrb[10].mxu1 }
 0x2a6   : > { %v2906_v46 = vpop.f32.mrb[11].mxu1  ;;  %v1902_v16 = vsel %vm1886_vm2, %v1730_v45, -inf }
 0x2a7   : > { %1903 = vmax.xlane.f32.xlu0 %v1902_v16  ;;  %1906 = vmax.xlane.f32.xlu1 %v1905_v43 }
 0x2a9   : > { %v3540_v47 = vpop.f32.mrb[12].mxu1 }
 0x2aa   : > { %v2916_v48 = vpop.f32.mrb[13].mxu1  ;;  %v1908_v49 = vsel %vm1886_vm2, %v3540_v47, -inf }
 0x2ab   : > { %1909 = vmax.xlane.f32.xlu0 %v1908_v49 }
 0x2b8   : > { %993 = vrot.lane.b32.xlu1 %v3373_v30, %s3186_s17 }
 0x2c1   : > { %990 = vrot.lane.b32.xlu0 %v3373_v30, %s3188_s26 }
 0x328   : > { %v1889_v51 = vpop.xlane.xlu0 %1888 }
 0x329   : > { %v1911_v26 = vsub.f32 %v1350_v15, %v1889_v51 }
 0x32b   : > { %v1919_v40 = vmul.f32 1.442695, %v1911_v26 }
 0x32c   : > { %v1892_v54 = vpop.xlane.xlu1 %1891  ;;  %v1895_v55 = vpop.xlane.xlu0 %1894 }
 0x32d   : > { %3051 = vpow2.f32 %v1919_v40  ;;  %v1912_v13 = vsub.f32 %v1426_v23, %v1892_v54  ;;  %v1913_v14 = vsub.f32 %v1502_v20, %v1895_v55 }
 0x32f   : > { %v1921_v27 = vmul.f32 1.442695, %v1912_v13  ;;  %v1923_v41 = vmul.f32 1.442695, %v1913_v14 }
 0x330   : > { %v1898_v56 = vpop.xlane.xlu0 %1897  ;;  %v1901_v57 = vpop.xlane.xlu1 %1900 }
 0x331   : > { %3053 = vpow2.f32 %v1921_v27  ;;  %v1914_v52 = vsub.f32 %v1578_v35, %v1898_v56  ;;  %v1915_v58 = vsub.f32 %v1654_v31, %v1901_v57 }
 0x332   : > { %3055 = vpow2.f32 %v1923_v41 }
 0x333   : > { %v1925_v59 = vmul.f32 1.442695, %v1914_v52  ;;  %v1927_v60 = vmul.f32 1.442695, %v1915_v58 }
 0x334   : > { %v1904_v61 = vpop.xlane.xlu0 %1903  ;;  %v1907_v62 = vpop.xlane.xlu1 %1906 }
 0x335   : > { %3057 = vpow2.f32 %v1925_v59  ;;  %v1916_v53 = vsub.f32 %v1730_v45, %v1904_v61  ;;  %v1917_v63 = vsub.f32 %v1806_v39, %v1907_v62 }
 0x336   : > { %3059 = vpow2.f32 %v1927_v60 }
 0x337   : > { %v3548_v0 = vpop.eup %3051  ;;  %v1931_v1 = vmul.f32 1.442695, %v1917_v63  ;;  %v1929_v2 = vmul.f32 1.442695, %v1916_v53 }
 0x338   : > { %v3550_v3 = vpop.xlane.xlu0 %1909  ;;  %v1935_v4 = vsel %vm1886_vm2, %v3548_v0, 0.0  ;;  %v994_v5 = vpop.permute.xlu1 %993 }
 0x339   : > { %1936 = vadd.xlane.f32.xlu1 %v1935_v4  ;;  %v1022_v6 = vcombine.low %v988_v50, %v994_v5  ;;  %v1023_v17 = vcombine.high %v988_v50, %v994_v5  ;;  %3061 = vpow2.f32 %v1931_v1  ;;  %v1918_v62 = vsub.f32 %v3540_v47, %v3550_v3 }
 0x33a   : > { %3063 = vpow2.f32 %v1929_v2 }
 0x33b   : > { %v3554_v7 = vpop.eup %3053  ;;  %v1030_v10 = vrot.slane %v1022_v6, %v3380_v36  ;;  %v1037_v18 = vrot.slane %v1023_v17, %v3380_v36  ;;  %v1933_v53 = vmul.f32 1.442695, %v1918_v62 }
 0x33c   : > { %v3556_v8 = vpop.eup %3055  ;;  %v991_v9 = vpop.permute.xlu0 %990  ;;  %v1938_v11 = vsel %vm1886_vm2, %v3554_v7, 0.0 }
 0x33d   : > { %v1006_v12 = vcombine.low %v3373_v30, %v991_v9  ;;  %v1007_v15 = vcombine.high %v3373_v30, %v991_v9  ;;  %1939 = vadd.xlane.f32.xlu0 %v1938_v11  ;;  %v1941_v19 = vsel %vm1886_vm2, %v3556_v8, 0.0  ;;  %3065 = vpow2.f32 %v1933_v53 }
 0x33e   : > { %1942 = vadd.xlane.f32.xlu1 %v1941_v19 }
 0x33f   : > { %v3566_v20 = vpop.eup %3057  ;;  %v1014_v21 = vrot.slane %v1006_v12, %v3380_v36  ;;  %v1021_v23 = vrot.slane %v1007_v15, %v3380_v36 }
 0x340   : > { %v3570_v24 = vpop.eup %3059  ;;  %v1944_v25 = vsel %vm1886_vm2, %v3566_v20, 0.0 }
 0x341   : > { %v1070_v28 = vcombine.low %v1014_v21, %v1030_v10  ;;  %v1071_v30 = vcombine.high %v1014_v21, %v1030_v10  ;;  %v1086_v31 = vcombine.low %v1021_v23, %v1037_v18  ;;  %v1087_v32 = vcombine.high %v1021_v23, %v1037_v18  ;;  %1945 = vadd.xlane.f32.xlu0 %v1944_v25 }
 0x342   : > { %v1947_v34 = vsel %vm1886_vm2, %v3570_v24, 0.0 }
 0x343   : > { %v1078_v35 = vrot.slane %v1070_v28, %v3383_v44  ;;  %v1085_v37 = vrot.slane %v1071_v30, %v3383_v44  ;;  %v1094_v38 = vrot.slane %v1086_v31, %v3383_v44  ;;  %v1101_v39 = vrot.slane %v1087_v32, %v3383_v44  ;;  %1948 = vadd.xlane.f32.xlu1 %v1947_v34  ;;  %v3580_v42 = vpop.eup %3061 }
 0x344   : > { %v3582_v48 = vpop.eup %3063  ;;  %v1953_v49 = vsel %vm1886_vm2, %v3580_v42, 0.0 }
 0x345   : > { %v2809_v43 = vcombine.low %v1078_v35, %v1085_v37  ;;  %v2811_v45 = vcombine.high %v1078_v35, %v1085_v37  ;;  %v2813_v46 = vcombine.low %v1094_v38, %v1101_v39  ;;  %v2815_v16 = vcombine.high %v1094_v38, %v1101_v39  ;;  %1954 = vadd.xlane.f32.xlu0 %v1953_v49 }
 0x346   : > { %v1950_v27 = vsel %vm1886_vm2, %v3582_v48, 0.0 }
 0x347   : > { %v1150_v50 = vrot.slane %v2809_v43, %v3380_v36  ;;  %v1166_v51 = vrot.slane %v2811_v45, %v3380_v36  ;;  %v1182_v26 = vrot.slane %v2813_v46, %v3380_v36  ;;  %v1198_v40 = vrot.slane %v2815_v16, %v3380_v36  ;;  %v3604_v63 = vpop.eup %3065 }
 0x348   : > { %v1956_v1 = vsel %vm1886_vm2, %v3604_v63, 0.0 }
 0x349   : > { %v1206_v54 = vcombine.low %v1150_v50, %v1166_v51  ;;  %v1238_v55 = vcombine.low %v1182_v26, %v1198_v40  ;;  %v1207_v13 = vcombine.high %v1150_v50, %v1166_v51  ;;  %v1239_v14 = vcombine.high %v1182_v26, %v1198_v40  ;;  %1951 = vadd.xlane.f32.xlu0 %v1950_v27 }
 0x34b   : > { %v1214_v41 = vrot.slane %v1206_v54, %v3383_v44  ;;  %v1246_v56 = vrot.slane %v1238_v55, %v3383_v44  ;;  %v1221_v57 = vrot.slane %v1207_v13, %v3383_v44  ;;  %v1253_v52 = vrot.slane %v1239_v14, %v3383_v44 }
 0x34d   : > { %v1270_v58 = vcombine.low %v1214_v41, %v1246_v56  ;;  %v1271_v59 = vcombine.high %v1214_v41, %v1246_v56  ;;  %v1272_v60 = vcombine.low %v1221_v57, %v1253_v52  ;;  %v1273_v61 = vcombine.high %v1221_v57, %v1253_v52 }
 0x34f   : > { %2918 = vmatpush3.msra.mxu0 %v1270_v58  ;;  %2923 = vmatpush3.msra.mxu1 %v1271_v59 }
 0x350   : > { %2927 = vmatprep.subr.mxu0 %v3189_v22  ;;  %2932 = vmatprep.subr.mxu1 %v3189_v22 }
 0x354   : > { %1000 = vrot.lane.b32.xlu1 %v3377_v33, %s3188_s26 }
 0x35f   : > { %997 = vrot.lane.b32.xlu0 %v3377_v33, %s3187_s18 }
 0x378   : > { %1957 = vadd.xlane.f32.xlu1 %v1956_v1 }
 0x389   : > { %1003 = vrot.lane.b32.xlu1 %v3377_v33, %s3186_s17 }
 0x3c6   : > { %v1937_v2 = vpop.xlane.xlu1 %1936 }
 0x3c7   : > { %3067 = vrcp.f32 %v1937_v2 }
 0x3ca   : > { %v1940_v4 = vpop.xlane.xlu0 %1939 }
 0x3cb   : > { %3069 = vrcp.f32 %v1940_v4  ;;  %v1943_v5 = vpop.xlane.xlu1 %1942 }
 0x3cc   : > { %3071 = vrcp.f32 %v1943_v5 }
 0x3ce   : > { %v1946_v6 = vpop.xlane.xlu0 %1945 }
 0x3cf   : > { %3073 = vrcp.f32 %v1946_v6 }
 0x3d1   : > { %v3068_v47 = vpop.eup %3067 }
 0x3d2   : > { %v1967_v3 = vmul.f32 %v3068_v47, %v3548_v0 }
 0x3d4   : > { %2920 = vmatmul.mubr.msk.f32.vlgmr.msra.gmra.mrb[14].mxu0 %vm1886_vm2, %v1967_v3 }
 0x3d5   : > { %v3070_v17 = vpop.eup %3069  ;;  %2928 = vmatpush3.msra.mxu0 %v1272_v60  ;;  %2929 = vmatprep.mubr.msk.f32.mxu0 %vm3190_vm1, %v3189_v22 }
 0x3d6   : > { %v3072_v9 = vpop.eup %3071  ;;  %v1968_v10 = vmul.f32 %v3070_v17, %v3554_v7  ;;  %2937 = vmatprep.subr.mxu0 %v3189_v22  ;;  %v1949_v7 = vpop.xlane.xlu1 %1948 }
 0x3d7   : > { %v1969_v11 = vmul.f32 %v3072_v9, %v3556_v8  ;;  %v1955_v8 = vpop.xlane.xlu0 %1954  ;;  %3075 = vrcp.f32 %v1949_v7 }
 0x3d8   : > { %2925 = vmatmul.mubr.msk.f32.vlgmr.msra.gmra.mrb[14].mxu1 %vm1886_vm2, %v1968_v10 }
 0x3d9   : > { %v3074_v12 = vpop.eup %3073  ;;  %2930 = vmatmul.mubr.msk.f32.vlgmr.msra.gmra.mrb[16].mxu0 %vm1886_vm2, %v1969_v11  ;;  %2933 = vmatpush3.msra.mxu1 %v1273_v61 }
 0x3da   : > { %v1970_v0 = vmul.f32 %v3074_v12, %v3566_v20  ;;  %2934 = vmatprep.mubr.msk.f32.mxu1 %vm3190_vm1, %v3189_v22  ;;  %2942 = vmatprep.subr.mxu1 %v3189_v22  ;;  %v1001_v15 = vpop.permute.xlu1 %1000 }
 0x3db   : > { %2939 = vmatprep.mubr.msk.f32.mxu0 %vm3190_vm1, %v3189_v22  ;;  %v1952_v18 = vpop.xlane.xlu0 %1951  ;;  %v1038_v20 = vcombine.low %v3377_v33, %v1001_v15  ;;  %v1039_v21 = vcombine.high %v3377_v33, %v1001_v15 }
 0x3dc   : > { %2935 = vmatmul.mubr.msk.f32.vlgmr.msra.gmra.mrb[16].mxu1 %vm1886_vm2, %v1970_v0  ;;  %3077 = vrcp.f32 %v1952_v18 }
 0x3dd   : > { %2944 = vmatprep.mubr.msk.f32.mxu1 %vm3190_vm1, %v3189_v22  ;;  %v1046_v31 = vrot.slane %v1038_v20, %v3380_v36  ;;  %v1053_v32 = vrot.slane %v1039_v21, %v3380_v36  ;;  %3079 = vrcp.f32 %v1955_v8 }
 0x3df   : > { %v998_v23 = vpop.permute.xlu0 %997 }
 0x3e1   : > { %v3076_v14 = vpop.eup %3075 }
 0x3e2   : > { %v1971_v4 = vmul.f32 %v3076_v14, %v3570_v24 }
 0x3e6   : > { %v3078_v52 = vpop.eup %3077 }
 0x3e7   : > { %v3080_v60 = vpop.eup %3079  ;;  %v1972_v5 = vmul.f32 %v3078_v52, %v3582_v48 }
 0x3e8   : > { %v1973_v3 = vmul.f32 %v3080_v60, %v3580_v42  ;;  %v3193_v60 = vmov 1966171168  }
 0x405   : > { %v1958_v19 = vpop.xlane.xlu1 %1957 }
 0x406   : > { %3081 = vrcp.f32 %v1958_v19 }
 0x409   : > { %v1004_v25 = vpop.permute.xlu1 %1003 }
 0x40a   : > { %v1054_v28 = vcombine.low %v998_v23, %v1004_v25  ;;  %v1055_v30 = vcombine.high %v998_v23, %v1004_v25 }
 0x40c   : > { %v1062_v34 = vrot.slane %v1054_v28, %v3380_v36  ;;  %v1069_v35 = vrot.slane %v1055_v30, %v3380_v36 }
 0x40e   : > { %v1102_v37 = vcombine.low %v1046_v31, %v1062_v34  ;;  %v1103_v38 = vcombine.high %v1046_v31, %v1062_v34  ;;  %v1118_v39 = vcombine.low %v1053_v32, %v1069_v35  ;;  %v1119_v43 = vcombine.high %v1053_v32, %v1069_v35 }
 0x410   : > { %v1110_v33 = vrot.slane %v1102_v37, %v3383_v44  ;;  %v1117_v45 = vrot.slane %v1103_v38, %v3383_v44  ;;  %v1126_v46 = vrot.slane %v1118_v39, %v3383_v44  ;;  %v1133_v16 = vrot.slane %v1119_v43, %v3383_v44  ;;  %v3082_v2 = vpop.eup %3081 }
 0x411   : > { %v1974_v17 = vmul.f32 %v3082_v2, %v3604_v63 }
 0x412   : > { %v2810_v49 = vcombine.low %v1110_v33, %v1117_v45  ;;  %v2812_v50 = vcombine.high %v1110_v33, %v1117_v45  ;;  %v2814_v51 = vcombine.low %v1126_v46, %v1133_v16  ;;  %v2816_v26 = vcombine.high %v1126_v46, %v1133_v16  ;;  %v2841_v46 = vld [vmem:[%s3710_s2] ss:$0 sm:$0xff] }
 0x414   : > { %v1157_v40 = vrot.slane %v2810_v49, %v3380_v36  ;;  %v1173_v54 = vrot.slane %v2812_v50, %v3380_v36  ;;  %v1189_v55 = vrot.slane %v2814_v51, %v3380_v36  ;;  %v1205_v13 = vrot.slane %v2816_v26, %v3380_v36 }
 0x416   : > { %v1222_v27 = vcombine.low %v1157_v40, %v1173_v54  ;;  %v1254_v41 = vcombine.low %v1189_v55, %v1205_v13  ;;  %v1223_v56 = vcombine.high %v1157_v40, %v1173_v54  ;;  %v1255_v57 = vcombine.high %v1189_v55, %v1205_v13 }
 0x418   : > { %v1230_v58 = vrot.slane %v1222_v27, %v3383_v44  ;;  %v1262_v59 = vrot.slane %v1254_v41, %v3383_v44  ;;  %v1237_v61 = vrot.slane %v1223_v56, %v3383_v44  ;;  %v1269_v62 = vrot.slane %v1255_v57, %v3383_v44 }
 0x41a   : > { %v1274_v53 = vcombine.low %v1230_v58, %v1262_v59  ;;  %v1275_v1 = vcombine.high %v1230_v58, %v1262_v59  ;;  %v1276_v6 = vcombine.low %v1237_v61, %v1269_v62  ;;  %v1277_v47 = vcombine.high %v1237_v61, %v1269_v62 }
 0x41b   : > { %v2669_v61 = vunpack.c.l.s4 %v3193_v60 }
 0x41c   : > { %2938 = vmatpush3.msra.mxu0 %v1274_v53  ;;  %2943 = vmatpush3.msra.mxu1 %v1275_v1 }
 0x41d   : > { %2940 = vmatmul.mubr.msk.f32.vlgmr.msra.gmra.mrb[18].mxu0 %vm1886_vm2, %v1971_v4  ;;  %2945 = vmatmul.mubr.msk.f32.vlgmr.msra.gmra.mrb[18].mxu1 %vm1886_vm2, %v1972_v5  ;;  %v2670_v5 = vunpack.c.0.s8 %v2669_v61 }
 0x41e   : > { %2947 = vmatprep.subr.mxu0 %v3189_v22  ;;  %2952 = vmatprep.subr.mxu1 %v3189_v22 }
 0x41f   : > { %2948 = vmatpush3.msra.mxu0 %v1276_v6  ;;  %2953 = vmatpush3.msra.mxu1 %v1277_v47 }
 0x420   : > { %2949 = vmatprep.mubr.msk.f32.mxu0 %vm3190_vm1, %v3189_v22  ;;  %2954 = vmatprep.mubr.msk.f32.mxu1 %vm3190_vm1, %v3189_v22 }
 0x421   : > { %2950 = vmatmul.mubr.msk.f32.vlgmr.msra.gmra.mrb[20].mxu0 %vm1886_vm2, %v1973_v3  ;;  %2955 = vmatmul.mubr.msk.f32.vlgmr.msra.gmra.mrb[20].mxu1 %vm1886_vm2, %v1974_v17 }
 0x4a7   : > { %v2044_v24 = vpop.f32.mrb[14].mxu0 }
 0x4a8   : > { %v2921_v48 = vpop.f32.mrb[15].mxu0  ;;  %v2559_v10 = vsel %vm275_vm0, %v2044_v24, 0.0 }
 0x4ab   : > { %v2117_v9 = vpop.f32.mrb[14].mxu1 }
 0x4ac   : > { %v2560_v42 = vsel %vm275_vm0, %v2117_v9, 0.0  ;;  %v2190_v63 = vpop.f32.mrb[16].mxu0  ;;  %v2926_v11 = vpop.f32.mrb[15].mxu1  ;;  %v2673_v9 = vsub.s32 %v2670_v5, %v3371_v29 }
 0x4ad   : > { %v2561_v12 = vadd.f32 %v2560_v42, %v2559_v10  ;;  %v2931_v0 = vpop.f32.mrb[17].mxu0  ;;  %v2562_v7 = vsel %vm275_vm0, %v2190_v63, 0.0 }
 0x4af   : > { %v2563_v8 = vadd.f32 %v2562_v7, %v2561_v12  ;;  %v2263_v15 = vpop.f32.mrb[16].mxu1  ;;  %v2690_v12 = vld [vmem:[%s200_s24] sm:$0x3] }
 0x4b0   : > { %v2564_v18 = vsel %vm275_vm0, %v2263_v15, 0.0  ;;  %v2936_v19 = vpop.f32.mrb[17].mxu1 }
 0x4b1   : > { %v2565_v20 = vadd.f32 %v2564_v18, %v2563_v8 }
 0x4f0   : > { %v2336_v21 = vpop.f32.mrb[18].mxu0  ;;  %v2409_v23 = vpop.f32.mrb[18].mxu1 }
 0x4f1   : > { %v2566_v25 = vsel %vm275_vm0, %v2336_v21, 0.0  ;;  %v2941_v28 = vpop.f32.mrb[19].mxu0  ;;  %v2946_v30 = vpop.f32.mrb[19].mxu1  ;;  %v2568_v32 = vsel %vm275_vm0, %v2409_v23, 0.0 }
 0x4f2   : > { %v2567_v31 = vadd.f32 %v2566_v25, %v2565_v20 }
 0x4f4   : > { %v2569_v34 = vadd.f32 %v2568_v32, %v2567_v31  ;;  %v2482_v35 = vpop.f32.mrb[20].mxu0  ;;  %v2555_v37 = vpop.f32.mrb[20].mxu1 }
 0x4f5   : > { %v2570_v38 = vsel %vm275_vm0, %v2482_v35, 0.0  ;;  %v2951_v39 = vpop.f32.mrb[21].mxu0  ;;  %v2956_v43 = vpop.f32.mrb[21].mxu1  ;;  %v2572_v45 = vsel %vm275_vm0, %v2555_v37, 0.0 }
 0x4f6   : > { %v2571_v33 = vadd.f32 %v2570_v38, %v2569_v34 }
 0x4f8   : > { %v2573_v16 = vadd.f32 %v2572_v45, %v2571_v33 }
 0x4fa   : > { %v2581_v49 = vadd.f32 %v2841_v46, %v2573_v16 }
 0x4fc   : > { %v2582_v50 = vcombine.high %v2581_v49, %v3189_v22  ;;  %v2589_v51 = vrot.slane %v2581_v49, %v3380_v36 }
 0x4fe   : > { %v2596_v26 = vrot.slane %v2582_v50, %v3380_v36  ;;  %v2597_v40 = vcombine.high %v2589_v51, %v3189_v22  ;;  %v2604_v54 = vrot.slane %v2589_v51, %v3383_v44 }
 0x500   : > { %v2619_v55 = vrot.slane %v2596_v26, %v3383_v44  ;;  %v2612_v13 = vcombine.high %v2596_v26, %v3189_v22  ;;  %v2627_v14 = vcombine.high %v2604_v54, %v3189_v22  ;;  %v2611_v41 = vrot.slane %v2597_v40, %v3383_v44 }
 0x502   : > { %v2629_v27 = vcombine.high %v2619_v55, %v3189_v22  ;;  %v2626_v56 = vrot.slane %v2612_v13, %v3383_v44  ;;  %v2628_v58 = vcombine.high %v2611_v41, %v3189_v22 }
 0x504   : > { %v3018_v57 = vpack.i.bf16 %v2629_v27, %v2627_v14  ;;  %v3023_v36 = vpack.i.bf16 %v2626_v56, %v2611_v41  ;;  %v2630_v52 = vcombine.high %v2626_v56, %v3189_v22 }
 0x506   : > { %3019 = vrot.lane.b32.xlu0 %v3018_v57, %s3186_s17  ;;  %3024 = vrot.lane.b32.xlu1 %v3023_v36, %s3188_s26  ;;  %v3028_v59 = vpack.i.bf16 %v2630_v52, %v2628_v58 }
 0x50a   : > { %3029 = vrot.lane.b32.xlu0 %v3028_v59, %s3187_s18 }
 0x578   : > { %v3020_v62 = vpop.permute.xlu0 %3019  ;;  %v3025_v53 = vpop.permute.xlu1 %3024 }
 0x579   : > { %v3022_v44 = vunpack.i.h.bf16 %v3020_v62  ;;  %v3021_v1 = vunpack.i.l.bf16 %v3020_v62  ;;  %v3027_v2 = vunpack.i.h.bf16 %v3025_v53  ;;  %v3026_v4 = vunpack.i.l.bf16 %v3025_v53 }
 0x57b   : > { %v2660_v6 = vsel %vm275_vm0, %v2619_v55, %v3022_v44  ;;  %v2655_v47 = vsel %vm275_vm0, %v2604_v54, %v3021_v1 }
 0x57c   : > { %v3030_v22 = vpop.permute.xlu0 %3029  ;;  %v2661_v24 = vsel %vm2656_vm3, %v2660_v6, %v3027_v2  ;;  %v2657_v48 = vsel %vm2656_vm3, %v2655_v47, %v3026_v4 }
 0x57d   : > { %v3032_v3 = vunpack.i.h.bf16 %v3030_v22  ;;  %v3031_v17 = vunpack.i.l.bf16 %v3030_v22 }
 0x57f   : > { %v2662_v10 = vsel %vm2658_vm4, %v2661_v24, %v3032_v3  ;;  %v2659_v42 = vsel %vm2658_vm4, %v2657_v48, %v3031_v17 }
 0x580   : > { %v2842_v63 = vpack.c.bf16 %v2662_v10, %v2659_v42 }
 0x582   : > { %v2674_v11 = vrot.slane %v2842_v63, %v2673_v9 }
 0x584   : > { %v2681_v0 = vrot.slane %v2674_v11, %v2673_v9 }
 0x586   : > { %v2691_v7 = vsel %vm2689_vm11, %v2681_v0, %v2690_v12 }
 0x587   : > { %2692 = vst [vmem:[%s200_s24] sm:$0x3] %v2691_v7 }
 0x588 PF: > { %p14_p8 = scmp.ge.s32.totalorder %s3258_s22, 4   ;;  %s3723_s12 = smov %s3171_s13 }
 0x589   : > { %s3724_s13 = smov %s3175_s14  ;;  %s3725_s14 = smov %s3284_s10 }
 0x58a   : > { %s3726_s15 = smov %s3258_s22  ;;  %16 = sbr.rel (!%p14_p8) target bundleno = 4 (0x4), region = 76 }
 0x591   :  { %2712 = vsyncpa [#allocation3], 1 }
 0x592   :  { %2714 = vsyncpa [#allocation3 + $0x1], 1 }
 0x593   :  { %2715 = vsyncpa [#allocation5], 1 }

</bundles_post_ra>
